<compile_context>
chip_gen: v7x
topology: tpu7x:2x2x1
jax: 0.10.0
libtpu: 0.0.40
codegen_flags: <defaults>
</compile_context>

<pallas_src>
import jax
import jax.numpy as jnp
from jax.experimental import pallas as pl
from jax.experimental.pallas import tpu as pltpu


def _round_up(x, m):
    return ((x + m - 1) // m) * m


def _cdiv(a, b):
    return -(-a // b)


def _vmem_capacity_bytes():
    try:
        return int(pltpu.get_tpu_info().vmem_capacity_bytes)
    except Exception:
        return 64 * 1024 * 1024  # conservative fallback: v7x per-TC VMEM


def _embed_resident_kernel(tok_ref, w_ref, out_ref):
    """Small-vocab fast path: W_E resident in VMEM; VMEM-local row gather."""
    tile = out_ref.shape[0]
    base = pl.program_id(0) * tile

    @pl.loop(0, tile)
    def _row(r):
        t = tok_ref[base + r]
        out_ref[pl.ds(r, 1), :] = w_ref[pl.ds(t, 1), :]


def _make_hbm_gather_kernel(tile, tiles_per_chunk):
    """General path: W_E stays in HBM; double-buffered row-gather DMA pipeline.

    Grid is (chunk [parallel], tile-in-chunk [arbitrary]). Staging buffer holds
    2 * tile rows (two slots). At inner step t we:
      1. (t == 0) prime: issue all row gathers for this chunk's first tile.
      2. prefetch: issue all row gathers for tile t+1 into the other slot.
      3. wait on this tile's row gathers, then write one dense (tile, d_model)
         slab to the output block.
    """

    def kernel(tok_ref, w_hbm_ref, out_ref, buf_ref, sems):
        c = pl.program_id(0)
        t = pl.program_id(1)
        flat_tile = c * tiles_per_chunk + t

        def issue_tile(tile_idx, slot_base):
            tok_base = tile_idx * tile

            @pl.loop(0, tile)
            def _issue(r):
                tok = tok_ref[tok_base + r]
                pltpu.make_async_copy(
                    w_hbm_ref.at[pl.ds(tok, 1), :],
                    buf_ref.at[pl.ds(slot_base + r, 1), :],
                    sems.at[slot_base + r],
                ).start()

        # Prime this chunk's pipeline with its first tile (slot 0).
        @pl.when(t == 0)
        def _prime():
            issue_tile(flat_tile, 0)

        # Prefetch the next tile of this chunk into the other slot BEFORE
        # waiting on the current one, so the DMA queue stays full.
        @pl.when(t + 1 < tiles_per_chunk)
        def _prefetch():
            issue_tile(flat_tile + 1, ((t + 1) & 1) * tile)

        # Drain the current tile's row gathers.
        row_base = pl.multiple_of((t & 1) * tile, 8)

        @pl.loop(0, tile)
        def _drain(r):
            pltpu.make_async_copy(
                w_hbm_ref.at[pl.ds(0, 1), :],
                buf_ref.at[pl.ds(row_base + r, 1), :],
                sems.at[row_base + r],
            ).wait()

        # One dense (tile, d_model) store -> single large unmasked writeback.
        out_ref[...] = buf_ref[pl.ds(row_base, tile), :]

    return kernel


def embed_forward(tokens, W_E, *, tile_tokens=256, use_resident=None):
    """Pallas equivalent of Embed.forward: returns W_E[tokens, :]."""
    batch, seq = tokens.shape
    d_vocab, d_model = W_E.shape
    dtype = W_E.dtype
    itemsize = jnp.dtype(dtype).itemsize

    n = batch * seq
    # Clamp ids so the data-dependent gather can never go out of bounds.
    tok_flat = jnp.clip(tokens.reshape(n).astype(jnp.int32), 0, d_vocab - 1)

    # Token tile per grid step: sublane-dense (multiple of 8), capped by n.
    tile = _round_up(min(tile_tokens, _round_up(n, 8)), 8)
    num_tiles = _cdiv(n, tile)

    table_bytes = d_vocab * d_model * itemsize
    tile_bytes = tile * d_model * itemsize
    vmem_cap = _vmem_capacity_bytes()

    if use_resident is None:
        # Resident table + buffers must fit with generous headroom.
        use_resident = (table_bytes + 3 * tile_bytes) <= int(0.5 * vmem_cap)

    if use_resident:
        n_pad = num_tiles * tile
        if n_pad != n:
            tok_flat = jnp.pad(tok_flat, (0, n_pad - n))  # pads with token 0 (valid)
        grid = (num_tiles,)
        kernel = _embed_resident_kernel
        in_specs = [
            # Full table, constant block index -> DMA'd HBM->VMEM once, resident.
            pl.BlockSpec((d_vocab, d_model), lambda i, tok: (0, 0)),
        ]
        out_specs = pl.BlockSpec((tile, d_model), lambda i, tok: (i, 0))
        scratch_shapes = []
        dim_semantics = ("parallel",)  # independent tiles; v7x 2-TC shard
        vmem_need = table_bytes + 2 * tile_bytes
    else:
        # 2-D grid: outer chunks are independent ("parallel", v7x megacore),
        # inner tiles are pipelined with cross-step DMA prefetch ("arbitrary").
        n_chunks = 2 if num_tiles >= 2 else 1
        tiles_per_chunk = _cdiv(num_tiles, n_chunks)
        total_tiles = n_chunks * tiles_per_chunk
        n_pad = total_tiles * tile
        if n_pad != n:
            tok_flat = jnp.pad(tok_flat, (0, n_pad - n))
        grid = (n_chunks, tiles_per_chunk)
        kernel = _make_hbm_gather_kernel(tile, tiles_per_chunk)
        in_specs = [pl.BlockSpec(memory_space=pl.ANY)]  # raw HBM ref, manual DMA
        out_specs = pl.BlockSpec(
            (tile, d_model),
            lambda c, t, tok, tpc=tiles_per_chunk: (c * tpc + t, 0),
        )
        scratch_shapes = [
            pltpu.VMEM((2 * tile, d_model), dtype),  # 2-slot gather staging
            pltpu.SemaphoreType.DMA((2 * tile,)),    # one sem per in-flight row
        ]
        dim_semantics = ("parallel", "arbitrary")
        vmem_need = 4 * tile_bytes  # 2-slot staging + double-buffered output

    vmem_limit = int(min(vmem_cap, max(vmem_need + (8 << 20), 32 << 20)))

    grid_spec = pltpu.PrefetchScalarGridSpec(
        num_scalar_prefetch=1,          # token ids -> SMEM, drive the gather
        grid=grid,
        in_specs=in_specs,
        out_specs=out_specs,
        scratch_shapes=scratch_shapes,
    )

    out_flat = pl.pallas_call(
        kernel,
        out_shape=jax.ShapeDtypeStruct((n_pad, d_model), dtype),
        grid_spec=grid_spec,
        compiler_params=pltpu.CompilerParams(
            dimension_semantics=dim_semantics,
            vmem_limit_bytes=vmem_limit,
        ),
    )(tok_flat, W_E)

    return out_flat[:n].reshape(batch, seq, d_model)


if __name__ == "__main__":
    # Small, deterministic configs consistent with the module's __init__
    # (d_vocab x d_model weight, normal init with std = init_range).
    init_range = 0.02
    key = jax.random.PRNGKey(0)

    # --- Test 1: small config, exercises both the resident fast path (auto)
    #             and the forced HBM gather path. -------------------------------
    batch, seq = 2, 8
    d_vocab, d_model = 512, 128
    k_w, k_tok, key = jax.random.split(key, 3)
    W_E = (init_range * jax.random.normal(k_w, (d_vocab, d_model))).astype(jnp.float32)
    tokens = jax.random.randint(k_tok, (batch, seq), 0, d_vocab, dtype=jnp.int32)
    ref = jnp.take(W_E, tokens, axis=0)

    out_resident = jax.block_until_ready(embed_forward(tokens, W_E))
    assert out_resident.shape == (batch, seq, d_model)
    assert jnp.allclose(out_resident, ref), "resident-path mismatch vs reference"

    out_hbm = jax.block_until_ready(embed_forward(tokens, W_E, use_resident=False))
    assert jnp.allclose(out_hbm, ref), "HBM-gather-path mismatch vs reference"

    # --- Test 2: multi-tile case that exercises the 2-D (parallel, arbitrary)
    #             grid and the cross-step DMA prefetch pipeline. ----------------
    batch2, seq2 = 4, 128
    d_vocab2, d_model2 = 2048, 256
    k_w2, k_tok2, key = jax.random.split(key, 3)
    W_E2 = (init_range * jax.random.normal(k_w2, (d_vocab2, d_model2))).astype(
        jnp.float32
    )
    tokens2 = jax.random.randint(k_tok2, (batch2, seq2), 0, d_vocab2, dtype=jnp.int32)
    ref2 = jnp.take(W_E2, tokens2, axis=0)

    out2_hbm = jax.block_until_ready(
        embed_forward(tokens2, W_E2, tile_tokens=64, use_resident=False)
    )
    assert jnp.allclose(out2_hbm, ref2), "pipelined HBM-gather mismatch vs reference"

    out2_auto = jax.block_until_ready(embed_forward(tokens2, W_E2))
    assert jnp.allclose(out2_auto, ref2), "auto-path mismatch vs reference"

    print("KERNEL_OK")
</pallas_src>

<mosaic_0001>
module attributes {stable_mosaic.version = 11 : i64} {
  func.func @_embed_resident_kernel(%arg0: i32, %arg1: memref<16xi32, #tpu.memory_space<smem>>, %arg2: memref<512x128xf32, #tpu.memory_space<vmem>>, %arg3: memref<16x128xf32, #tpu.memory_space<vmem>>) attributes {dimension_semantics = [#tpu.dimension_semantics<parallel>], iteration_bounds = array<i64: 1>, scalar_prefetch = 1 : i64, scratch_operands = 0 : i64, tpu.core_type = #tpu.core_type<tc>, window_params = [{pipeline_mode = #tpu.pipeline_mode<synchronous>, transform_indices = @transform_0, window_bounds = array<i64: 512, 128>}, {transform_indices = @transform_1, window_bounds = array<i64: 16, 128>}]} {
    %c16_i32 = arith.constant 16 : i32
    %0 = arith.muli %arg0, %c16_i32 : i32
    %c0_i32 = arith.constant 0 : i32
    %c16_i32_0 = arith.constant 16 : i32
    %1 = arith.addi %c0_i32, %c16_i32_0 : i32
    %c1_i32 = arith.constant 1 : i32
    scf.for %arg4 = %c0_i32 to %1 step %c1_i32  : i32 {
      %c1_i32_2 = arith.constant 1 : i32
      %2 = arith.muli %arg4, %c1_i32_2 : i32
      %c0_i32_3 = arith.constant 0 : i32
      %3 = arith.addi %c0_i32_3, %2 : i32
      %4 = arith.addi %0, %3 : i32
      %5 = arith.index_cast %4 : i32 to index
      %6 = memref.load %arg1[%5] : memref<16xi32, #tpu.memory_space<smem>>
      %7 = arith.index_cast %6 : i32 to index
      %c0 = arith.constant 0 : index
      %8 = vector.load %arg2[%7, %c0] : memref<512x128xf32, #tpu.memory_space<vmem>>, vector<1x128xf32>
      %9 = arith.index_cast %3 : i32 to index
      %c0_4 = arith.constant 0 : index
      %10 = vector.load %arg3[%9, %c0_4] : memref<16x128xf32, #tpu.memory_space<vmem>>, vector<1x128xf32>
      tpu.vector_store %arg3[%9, %c0_4], %8 {strides = array<i32>} : memref<16x128xf32, #tpu.memory_space<vmem>>, vector<1x128xf32>,
    }
    %c16_i32_1 = arith.constant 16 : i32
    return
  }
  func.func @transform_0(%arg0: i32, %arg1: memref<16xi32, #tpu.memory_space<smem>>) -> (i32, i32) {
    %c0_i32 = arith.constant 0 : i32
    %c0_i32_0 = arith.constant 0 : i32
    %c0_i32_1 = arith.constant 0 : i32
    return %c0_i32, %c0_i32_0 : i32, i32
  }
  func.func @transform_1(%arg0: i32, %arg1: memref<16xi32, #tpu.memory_space<smem>>) -> (i32, i32) {
    %c0_i32 = arith.constant 0 : i32
    %c0_i32_0 = arith.constant 0 : i32
    return %arg0, %c0_i32 : i32, i32
  }
}

</mosaic_0001>

<bundles_post_ra>
// kernel: tpu_custom_call.1
= control target key start
LH: loop header
LB: loop body
LE: loop exit
PB: predicated region body
PF: predicated region fallthrough
CT: control target
= control target key end

     0   :  { %s208_s0 = inlined_call_operand.hbm [shape: s32[16], index: 0, kind: input, shape index: {}]   ;;  %s209_s1 = inlined_call_operand.hbm [shape: f32[512,128], index: 1, kind: input, shape index: {}]   ;;  %s210_s2 = inlined_call_operand.hbm [shape: f32[16,128], index: 2, kind: output, shape index: {}]  }
   0x1   :  { %s78_s11 = scalar_lea.hbm %s208_s0, 16 }
   0x2   :  { %p79_p0 = scmp.ne.s32.totalorder %s208_s0, %s78_s11  ;;  %p82_p1 = scmp.lt.u32.totalorder %s78_s11, %s208_s0 }
   0x4   :  { %p84_p2 = pnand %p82_p1, %p79_p0 }
   0x6   :  { %87 = shalt.err (!%p84_p2)  }
   0x7   :  { %s146_s16 = smov [#allocation3]  }
   0x8   :  { %8 = dma.hbm_to_smem %s208_s0, 16, %s146_s16, [#allocation2] }
   0x9   :  { %136 = dma.done.wait [#allocation2], 16 }
   0xa   :  { %137 = vsyncadd [#allocation2], 4294967280 }
   0xb   :  { %10 = sfence }
   0xc   :  { %11 = vsyncpa [#allocation5], 0 }
   0xd   :  { %12 = vsyncpa [#allocation6], 0  ;;  %s147_s19 = smov [#allocation4]   ;;  %s88_s23 = scalar_lea.hbm %s209_s1, 8192 }
   0xe   :  { %s18_s20 = sshll.u32 %s147_s19, 4  ;;  %p89_p3 = scmp.ne.s32.totalorder %s209_s1, %s88_s23  ;;  %s19_s20 = int_to_ptr.vmem [resolvable:$true] %s18_s20 }
   0xf   :  { %p92_p4 = scmp.lt.u32.totalorder %s88_s23, %s209_s1 }
  0x11   :  { %p94_p5 = pnand %p92_p4, %p89_p3 }
  0x13   :  { %97 = shalt.err (!%p94_p5)
}
  0x14   :  { %s98_s0 = scalar_lea.vmem %s19_s20, 8192  ;;  %p103_p7 = scmp.lt.s32.totalorder %s19_s20, %s19_s20 }
  0x15   :  { %p99_p6 = scmp.ne.s32.totalorder %s19_s20, %s98_s0  ;;  %p104_p8 = scmp.lt.s32.totalorder %s98_s0, %s98_s0 }
  0x17   :  { %p105_p9 = por %p104_p8, %p103_p7 }
  0x19   :  { %p106_p10 = pnand %p105_p9, %p99_p6 }
  0x1b   :  { %109 = shalt.err (!%p106_p10)
}
  0x1c   :  { %s148_s28 = smov 128   ;;  %s149_s29 = smov 8  }
  0x1d   :  { %24 = dma.hbm_to_vmem [thread:$0]  %s209_s1, 8192, %s19_s20, [#allocation5], %s148_s28, %s148_s28, %s149_s29  }
  0x1e   :  { %138 = dma.done.wait [#allocation5], 8192  }
  0x1f   :  { %139 = vsyncadd [#allocation5], 4294959104  ;;  %s142_s4 = smov 0  }
  0x20 LB: > { %s36_s5 = sld [smem:[#allocation3 + %s144_s4]]  ;;  %s39_s7 = scalar_lea.vmem [#allocation7], %s144_s4  ;;  %s144_s4 = sphi %s142_s4, %s34_s4  }
  0x21   : > { %s34_s4 = sadd.s32 1, %s144_s4  }
  0x22   : > { %p31_p11 = scmp.ge.s32.totalorder %s34_s4, 16  }
  0x23   :  { %s150_s8 = smov (%p31_p11), [#allocation7]  }
  0x24   :  { %33 = sbr.rel (!%p31_p11) target bundleno = 32 (0x20), region = 37  ;;  %s46_s9 = sshll.u32 (%p31_p11), %s150_s8, 4  ;;  %s47_s9 = int_to_ptr.vmem [resolvable:$true] %s46_s9 }
  0x25   :  { %s110_s10 = scalar_lea.vmem (%p31_p11), %s47_s9, 256  ;;  %p115_p13 = scmp.lt.s32.totalorder (%p31_p11), %s47_s9, %s47_s9 }
  0x26   : > { %s37_s6 = scalar_lea.vmem [#allocation4], %s36_s5  ;;  %p111_p12 = scmp.ne.s32.totalorder (%p31_p11), %s47_s9, %s110_s10 }
  0x27   : > { %v38_v0 = vld [vmem:[%s37_s6] sm:$0x1]  ;;  %p116_p0 = scmp.lt.s32.totalorder (%p31_p11), %s110_s10, %s110_s10 }
  0x28   : > { %40 = vst [vmem:[%s39_s7] sm:$0x1] %v38_v0 }
  0x29   :  { %p117_p1 = por (%p31_p11), %p116_p0, %p115_p13 }
  0x2b   :  { %p118_p2 = pnand %p117_p1, %p111_p12 }
  0x2d   :  { %121 = shalt.err (!%p118_p2)
}
  0x2e   :  { %s122_s12 = scalar_lea.hbm %s210_s2, 256 }
  0x2f   :  { %p123_p3 = scmp.ne.s32.totalorder %s210_s2, %s122_s12  ;;  %p126_p4 = scmp.lt.u32.totalorder %s122_s12, %s210_s2 }
  0x31   :  { %p128_p5 = pnand %p126_p4, %p123_p3 }
  0x33   :  { %131 = shalt.err (!%p128_p5)
}
  0x34   :  { %52 = dma.vmem_to_hbm [thread:$0]  %s47_s9, 256, %s210_s2, [#allocation6], %s148_s28, %s148_s28, %s149_s29  }
  0x35   :  { %140 = dma.done.wait [#allocation6], 256  }
  0x36   :  { %141 = vsyncadd [#allocation6], 4294967040 }
  0x37   :  { %56 = vsyncpa [#allocation5], 1 }
  0x38   :  { %57 = vsyncpa [#allocation6], 1 }

</bundles_post_ra>
